<compile_context>
chip_gen: v6e
topology: v6e:2x2x1
jax: 0.10.0
libtpu: 0.0.40
codegen_flags: <defaults>
</compile_context>

<pallas_src>
import functools

import jax
import jax.numpy as jnp
from jax.experimental import pallas as pl
from jax.experimental.pallas import tpu as pltpu

_NEG_INF = -1e30


def _round_up(x, m):
    return (x + m - 1) // m * m


def attention_mil_kernel(n_valid_ref, x_ref, we_ref, be_ref, wv_ref, bv_ref,
                         wu_ref, bu_ref, m_out_ref, a_out_ref, m_sc, l_sc,
                         *, mm_dtype):
    i = pl.program_id(0)
    tile_n = x_ref.shape[0]
    n_valid = n_valid_ref[0]

    @pl.when(i == 0)
    def _init():
        m_sc[...] = jnp.full_like(m_sc, _NEG_INF)
        l_sc[...] = jnp.zeros_like(l_sc)
        m_out_ref[...] = jnp.zeros_like(m_out_ref)

    # x is NOT padded along N in HBM; the tail of the last tile is undefined
    # data and MUST be masked (row mask on H, column mask on the logits).
    row = i * tile_n + jax.lax.broadcasted_iota(jnp.int32, (tile_n, 1), 0)
    valid_row = row < n_valid                                  # (TILE_N, 1)

    x = x_ref[...].astype(mm_dtype)                            # (TILE_N, D)

    # embedding = Linear -> ReLU (-> Dropout == identity in eval)
    h = jnp.dot(x, we_ref[...], preferred_element_type=jnp.float32) + be_ref[...]
    h = jnp.maximum(h, 0.0)
    h = jnp.where(valid_row, h, 0.0)                           # (TILE_N, Hdp) f32
    h_mm = h.astype(mm_dtype)

    # attention_V -> tanh (tanh / bias in f32; only MXU operands are mm_dtype)
    av = jnp.tanh(
        jnp.dot(h_mm, wv_ref[...], preferred_element_type=jnp.float32)
        + bv_ref[...])                                         # (TILE_N, Hdp)

    # attention_U as a trans-B contraction over Hd so the per-instance logits
    # come out lane-dense as (1, TILE_N).
    logits = jax.lax.dot_general(
        wu_ref[...], av.astype(mm_dtype), (((1,), (1,)), ((), ())),
        preferred_element_type=jnp.float32,
    ) + bu_ref[0, 0]                                           # (1, TILE_N)

    col = i * tile_n + jax.lax.broadcasted_iota(jnp.int32, logits.shape, 1)
    logits = jnp.where(col < n_valid, logits, _NEG_INF)

    # Stream the raw masked logits out per tile (writeback overlaps compute);
    # A's softmax normalization is done in the wrapper.
    a_out_ref[0] = logits

    # Online (flash-style) softmax update, accumulating the pooled vector
    # directly into the VMEM-resident M output block.
    m_prev = m_sc[...]                                         # (1, 1)
    m_new = jnp.maximum(m_prev, jnp.max(logits, axis=-1, keepdims=True))
    alpha = jnp.exp(m_prev - m_new)                            # (1, 1)
    p = jnp.exp(logits - m_new)                                # (1, TILE_N) f32
    l_sc[...] = alpha * l_sc[...] + jnp.sum(p, axis=-1, keepdims=True)
    m_out_ref[...] = alpha * m_out_ref[...] + jnp.dot(
        p.astype(mm_dtype), h_mm, preferred_element_type=jnp.float32)
    m_sc[...] = m_new

    @pl.when(i == pl.num_programs(0) - 1)
    def _finalize():
        # Single scalar divide. pl.reciprocal(..., approx=True) would move it
        # to the EUP slot but costs ~1e-4 rel error; kept exact for f32 parity.
        m_out_ref[...] = (m_out_ref[...] / l_sc[...]).astype(m_out_ref.dtype)


def attention_mil(x, we, be, wv, bv, wu, bu, *, tile_n=512,
                  matmul_dtype=jnp.bfloat16):
    """AttentionMIL forward. x: (N, input_dim) f32. Returns (M: (Hd,), A: (N, 1))."""
    n, d = x.shape
    hd = we.shape[1]
    hdp = _round_up(hd, 128)

    # Large tiles amortize the per-grid-step pipeline overhead; clamp so a
    # short bag does not allocate a mostly-dead tile.
    tile_n = max(8, min(_round_up(tile_n, 8), _round_up(n, 8)))
    g = pl.cdiv(n, tile_n)

    f32 = jnp.float32
    mm = matmul_dtype
    # Pad only the (tiny) weights to lane-dense Hdp once at setup; padded
    # hidden units contribute exactly 0.  x stays unpadded (its feature dim is
    # the full array dim, which is a legal block dim); the N tail is masked
    # in-kernel instead of padding instances in HBM.
    wep = jnp.zeros((d, hdp), mm).at[:, :hd].set(we.astype(mm))
    bep = jnp.zeros((1, hdp), f32).at[:, :hd].set(be.reshape(1, hd).astype(f32))
    wvp = jnp.zeros((hdp, hdp), mm).at[:hd, :hd].set(wv.astype(mm))
    bvp = jnp.zeros((1, hdp), f32).at[:, :hd].set(bv.reshape(1, hd).astype(f32))
    wup = jnp.zeros((1, hdp), mm).at[:, :hd].set(wu.reshape(1, hd).astype(mm))
    bup = bu.reshape(1, 1).astype(f32)
    n_valid = jnp.asarray([n], jnp.int32)      # scalar prefetch (runtime value)

    kernel = functools.partial(attention_mil_kernel, mm_dtype=mm)

    # VMEM budget: x double buffer + resident weights (x2 buf) + outputs +
    # h/av temporaries; capped at 48 MiB to stay inside v7x's 64 MiB VMEM.
    wbytes = jnp.dtype(mm).itemsize
    est = (2 * tile_n * d * 4
           + 2 * (d * hdp + hdp * hdp + 3 * hdp) * wbytes
           + 2 * (hdp + tile_n + 2) * 4
           + 4 * tile_n * hdp * 4)
    vmem_limit = int(min(max(2 * est, 16 * 1024 * 1024), 48 * 1024 * 1024))

    m_out, a_logits = pl.pallas_call(
        kernel,
        out_shape=(
            jax.ShapeDtypeStruct((1, hdp), f32),           # pooled M (padded Hd)
            jax.ShapeDtypeStruct((g, 1, tile_n), f32),     # raw masked logits
        ),
        grid_spec=pltpu.PrefetchScalarGridSpec(
            num_scalar_prefetch=1,                         # n_valid -> SMEM
            grid=(g,),
            in_specs=[
                pl.BlockSpec((tile_n, d), lambda i, nv: (i, 0)),    # x (streamed)
                pl.BlockSpec((d, hdp), lambda i, nv: (0, 0)),       # We (resident)
                pl.BlockSpec((1, hdp), lambda i, nv: (0, 0)),       # be (resident)
                pl.BlockSpec((hdp, hdp), lambda i, nv: (0, 0)),     # Wv (resident)
                pl.BlockSpec((1, hdp), lambda i, nv: (0, 0)),       # bv (resident)
                pl.BlockSpec((1, hdp), lambda i, nv: (0, 0)),       # Wu row (resident)
                pl.BlockSpec(memory_space=pltpu.MemorySpace.SMEM),  # bu scalar
            ],
            out_specs=(
                pl.BlockSpec((1, hdp), lambda i, nv: (0, 0)),           # M (resident acc)
                pl.BlockSpec((1, 1, tile_n), lambda i, nv: (i, 0, 0)),  # logits (streamed)
            ),
            scratch_shapes=[
                pltpu.VMEM((1, 1), f32),      # running max
                pltpu.VMEM((1, 1), f32),      # running sum of exp
            ],
        ),
        compiler_params=pltpu.CompilerParams(
            dimension_semantics=("arbitrary",),   # online-softmax reduction axis
            vmem_limit_bytes=vmem_limit,
        ),
    )(n_valid, x.astype(f32), wep, bep, wvp, bvp, wup, bup)

    m = m_out[0, :hd]                                      # (Hd,)
    logits_valid = a_logits.reshape(g * tile_n)[:n]        # (N,)
    a = jax.nn.softmax(logits_valid).reshape(n, 1)         # (N, 1)
    return m, a


def reference(x, we, be, wv, bv, wu, bu):
    h = jnp.maximum(x @ we + be.reshape(1, -1), 0.0)
    av = jnp.tanh(h @ wv + bv.reshape(1, -1))
    logits = av @ wu.reshape(-1, 1) + bu.reshape(1, 1)
    a = jax.nn.softmax(logits, axis=0)
    m = jnp.sum(a * h, axis=0)
    return m, a


if __name__ == "__main__":
    # One bag; dims deliberately NOT multiples of 128 / tile_n so the in-kernel
    # tail masking and the multi-tile online softmax are exercised.
    N, INPUT_DIM, HIDDEN_DIM = 200, 96, 80

    key = jax.random.PRNGKey(0)
    kx, k1, k2, k3, k4, k5, k6 = jax.random.split(key, 7)

    x = jax.random.normal(kx, (N, INPUT_DIM), dtype=jnp.float32)
    we = jax.random.normal(k1, (INPUT_DIM, HIDDEN_DIM), dtype=jnp.float32) * 0.05
    be = jax.random.normal(k2, (1, HIDDEN_DIM), dtype=jnp.float32) * 0.05
    wv = jax.random.normal(k3, (HIDDEN_DIM, HIDDEN_DIM), dtype=jnp.float32) * 0.05
    bv = jax.random.normal(k4, (1, HIDDEN_DIM), dtype=jnp.float32) * 0.05
    wu = jax.random.normal(k5, (HIDDEN_DIM, 1), dtype=jnp.float32) * 0.05
    bu = jax.random.normal(k6, (1, 1), dtype=jnp.float32) * 0.05

    M_ref, A_ref = reference(x, we, be, wv, bv, wu, bu)

    # f32 MXU path, small tiles: exercises multi-tile online softmax and the
    # partial tail tile (masked in-kernel); strict parity with the f32 module.
    M32, A32 = attention_mil(x, we, be, wv, bv, wu, bu,
                             tile_n=128, matmul_dtype=jnp.float32)
    jax.block_until_ready((M32, A32))
    assert M32.shape == (HIDDEN_DIM,)
    assert A32.shape == (N, 1)
    assert jnp.allclose(jnp.sum(A32), 1.0, atol=1e-5)
    assert jnp.allclose(M32, M_ref, atol=1e-5, rtol=1e-5)
    assert jnp.allclose(A32, A_ref, atol=1e-5, rtol=1e-5)

    # Default fast path: bf16 MXU operands, big tile (clamped to the bag size),
    # f32 accumulation & softmax state. Looser tolerance vs the f32 reference.
    Mb, Ab = attention_mil(x, we, be, wv, bv, wu, bu, tile_n=512)
    jax.block_until_ready((Mb, Ab))
    assert Mb.shape == (HIDDEN_DIM,)
    assert Ab.shape == (N, 1)
    assert jnp.allclose(jnp.sum(Ab), 1.0, atol=1e-5)
    assert jnp.allclose(Mb, M_ref, atol=3e-2, rtol=3e-2)
    assert jnp.allclose(Ab, A_ref, atol=2e-3, rtol=3e-2)

    print("KERNEL_OK")
</pallas_src>

<mosaic_0001>
module attributes {stable_mosaic.version = 11 : i64} {
  func.func @attention_mil_kernel(%arg0: i32, %arg1: memref<1xi32, #tpu.memory_space<smem>>, %arg2: memref<128x96xf32, #tpu.memory_space<vmem>>, %arg3: memref<96x128xf32, #tpu.memory_space<vmem>>, %arg4: memref<1x128xf32, #tpu.memory_space<vmem>>, %arg5: memref<128x128xf32, #tpu.memory_space<vmem>>, %arg6: memref<1x128xf32, #tpu.memory_space<vmem>>, %arg7: memref<1x128xf32, #tpu.memory_space<vmem>>, %arg8: memref<1x1xf32, #tpu.memory_space<smem>>, %arg9: memref<1x128xf32, #tpu.memory_space<vmem>>, %arg10: memref<1x1x128xf32, #tpu.memory_space<vmem>>, %arg11: memref<1x1xf32, #tpu.memory_space<vmem>>, %arg12: memref<1x1xf32, #tpu.memory_space<vmem>>) attributes {dimension_semantics = [#tpu.dimension_semantics<arbitrary>], iteration_bounds = array<i64: 2>, scalar_prefetch = 1 : i64, scratch_operands = 2 : i64, tpu.core_type = #tpu.core_type<tc>, window_params = [{transform_indices = @transform_0, window_bounds = array<i64: 128, 96>}, {pipeline_mode = #tpu.pipeline_mode<synchronous>, transform_indices = @transform_1, window_bounds = array<i64: 96, 128>}, {pipeline_mode = #tpu.pipeline_mode<synchronous>, transform_indices = @transform_2, window_bounds = array<i64: 1, 128>}, {pipeline_mode = #tpu.pipeline_mode<synchronous>, transform_indices = @transform_3, window_bounds = array<i64: 128, 128>}, {pipeline_mode = #tpu.pipeline_mode<synchronous>, transform_indices = @transform_4, window_bounds = array<i64: 1, 128>}, {pipeline_mode = #tpu.pipeline_mode<synchronous>, transform_indices = @transform_5, window_bounds = array<i64: 1, 128>}, {transform_indices = @transform_6, window_bounds = array<i64: 1, 1>}, {pipeline_mode = #tpu.pipeline_mode<synchronous>, transform_indices = @transform_7, window_bounds = array<i64: 1, 128>}, {transform_indices = @transform_8, window_bounds = array<i64: 1, 1, 128>}]} {
    %c0 = arith.constant 0 : index
    %0 = memref.load %arg1[%c0] : memref<1xi32, #tpu.memory_space<smem>>
    %c0_i32 = arith.constant 0 : i32
    %1 = arith.cmpi eq, %arg0, %c0_i32 : i32
    %2 = arith.extui %1 : i1 to i32
    %c0_i32_0 = arith.constant 0 : i32
    %3 = arith.cmpi ne, %2, %c0_i32_0 : i32
    scf.if %3 {
      %cst_40 = arith.constant -1.000000e+30 : f32
      %69 = vector.broadcast %cst_40 : f32 to vector<1x1xf32>
      %c0_41 = arith.constant 0 : index
      %c0_42 = arith.constant 0 : index
      %70 = vector.load %arg11[%c0_41, %c0_42] : memref<1x1xf32, #tpu.memory_space<vmem>>, vector<1x1xf32>
      tpu.vector_store %arg11[%c0_41, %c0_42], %69 {strides = array<i32>} : memref<1x1xf32, #tpu.memory_space<vmem>>, vector<1x1xf32>,
      %cst_43 = arith.constant 0.000000e+00 : f32
      %71 = vector.broadcast %cst_43 : f32 to vector<1x1xf32>
      %c0_44 = arith.constant 0 : index
      %c0_45 = arith.constant 0 : index
      %72 = vector.load %arg12[%c0_44, %c0_45] : memref<1x1xf32, #tpu.memory_space<vmem>>, vector<1x1xf32>
      tpu.vector_store %arg12[%c0_44, %c0_45], %71 {strides = array<i32>} : memref<1x1xf32, #tpu.memory_space<vmem>>, vector<1x1xf32>,
      %cst_46 = arith.constant 0.000000e+00 : f32
      %73 = vector.broadcast %cst_46 : f32 to vector<1x128xf32>
      %c0_47 = arith.constant 0 : index
      %c0_48 = arith.constant 0 : index
      %74 = vector.load %arg9[%c0_47, %c0_48] : memref<1x128xf32, #tpu.memory_space<vmem>>, vector<1x128xf32>
      tpu.vector_store %arg9[%c0_47, %c0_48], %73 {strides = array<i32>} : memref<1x128xf32, #tpu.memory_space<vmem>>, vector<1x128xf32>,
    } else {
    }
    %c128_i32 = arith.constant 128 : i32
    %4 = arith.muli %arg0, %c128_i32 : i32
    %5 = tpu.iota {dimensions = array<i32: 0>} : vector<128x1xi32>
    %6 = vector.broadcast %4 : i32 to vector<128x1xi32>
    %7 = arith.addi %6, %5 : vector<128x1xi32>
    %8 = vector.broadcast %0 : i32 to vector<128x1xi32>
    %9 = arith.cmpi slt, %7, %8 : vector<128x1xi32>
    %c0_1 = arith.constant 0 : index
    %c0_2 = arith.constant 0 : index
    %10 = vector.load %arg2[%c0_1, %c0_2] : memref<128x96xf32, #tpu.memory_space<vmem>>, vector<128x96xf32>
    %c0_3 = arith.constant 0 : index
    %c0_4 = arith.constant 0 : index
    %11 = vector.load %arg3[%c0_3, %c0_4] : memref<96x128xf32, #tpu.memory_space<vmem>>, vector<96x128xf32>
    %cst = arith.constant dense<0.000000e+00> : vector<128x128xf32>
    %12 = tpu.matmul %10, %11, %cst {dimension_numbers = #tpu.dot_dimension_numbers<[1], [0], [0], [1], [0, 0, 1, 1], [], []>} : vector<128x96xf32>, vector<96x128xf32>, vector<128x128xf32> -> vector<128x128xf32>
    %c0_5 = arith.constant 0 : index
    %c0_6 = arith.constant 0 : index
    %13 = vector.load %arg4[%c0_5, %c0_6] : memref<1x128xf32, #tpu.memory_space<vmem>>, vector<1x128xf32>
    %14 = vector.broadcast %13 : vector<1x128xf32> to vector<128x128xf32>
    %15 = arith.addf %12, %14 : vector<128x128xf32>
    %cst_7 = arith.constant 0.000000e+00 : f32
    %16 = vector.broadcast %cst_7 : f32 to vector<128x128xf32>
    %17 = arith.maximumf %15, %16 : vector<128x128xf32>
    %cst_8 = arith.constant 0.000000e+00 : f32
    %18 = vector.shape_cast %9 : vector<128x1xi1> to vector<128x1xi1>
    %19 = vector.broadcast %18 : vector<128x1xi1> to vector<128x128xi1>
    %20 = vector.broadcast %cst_8 : f32 to vector<128x128xf32>
    %21 = arith.select %19, %17, %20 : vector<128x128xi1>, vector<128x128xf32>
    %c0_9 = arith.constant 0 : index
    %c0_10 = arith.constant 0 : index
    %22 = vector.load %arg5[%c0_9, %c0_10] : memref<128x128xf32, #tpu.memory_space<vmem>>, vector<128x128xf32>
    %cst_11 = arith.constant dense<0.000000e+00> : vector<128x128xf32>
    %23 = tpu.matmul %21, %22, %cst_11 {dimension_numbers = #tpu.dot_dimension_numbers<[1], [0], [0], [1], [0, 0, 1, 1], [], []>} : vector<128x128xf32>, vector<128x128xf32>, vector<128x128xf32> -> vector<128x128xf32>
    %c0_12 = arith.constant 0 : index
    %c0_13 = arith.constant 0 : index
    %24 = vector.load %arg6[%c0_12, %c0_13] : memref<1x128xf32, #tpu.memory_space<vmem>>, vector<1x128xf32>
    %25 = vector.broadcast %24 : vector<1x128xf32> to vector<128x128xf32>
    %26 = arith.addf %23, %25 : vector<128x128xf32>
    %27 = math.tanh %26 : vector<128x128xf32>
    %c0_14 = arith.constant 0 : index
    %c0_15 = arith.constant 0 : index
    %28 = vector.load %arg7[%c0_14, %c0_15] : memref<1x128xf32, #tpu.memory_space<vmem>>, vector<1x128xf32>
    %cst_16 = arith.constant dense<0.000000e+00> : vector<1x128xf32>
    %29 = tpu.matmul %28, %27, %cst_16 {dimension_numbers = #tpu.dot_dimension_numbers<[1], [1], [0], [0], [0, 0, 1, 0], [], []>} : vector<1x128xf32>, vector<128x128xf32>, vector<1x128xf32> -> vector<1x128xf32>
    %c0_17 = arith.constant 0 : index
    %c0_18 = arith.constant 0 : index
    %30 = memref.load %arg8[%c0_17, %c0_18] : memref<1x1xf32, #tpu.memory_space<smem>>
    %31 = vector.broadcast %30 : f32 to vector<1x128xf32>
    %32 = arith.addf %29, %31 : vector<1x128xf32>
    %c128_i32_19 = arith.constant 128 : i32
    %33 = arith.muli %arg0, %c128_i32_19 : i32
    %34 = tpu.iota {dimensions = array<i32: 1>} : vector<1x128xi32>
    %35 = vector.broadcast %33 : i32 to vector<1x128xi32>
    %36 = arith.addi %35, %34 : vector<1x128xi32>
    %37 = vector.broadcast %0 : i32 to vector<1x128xi32>
    %38 = arith.cmpi slt, %36, %37 : vector<1x128xi32>
    %cst_20 = arith.constant -1.000000e+30 : f32
    %39 = vector.broadcast %cst_20 : f32 to vector<1x128xf32>
    %40 = arith.select %38, %32, %39 : vector<1x128xi1>, vector<1x128xf32>
    %c0_21 = arith.constant 0 : index
    %c0_22 = arith.constant 0 : index
    %c0_23 = arith.constant 0 : index
    %41 = vector.load %arg10[%c0_21, %c0_22, %c0_23] : memref<1x1x128xf32, #tpu.memory_space<vmem>>, vector<1x1x128xf32>
    %42 = vector.shape_cast %41 : vector<1x1x128xf32> to vector<1x128xf32>
    %43 = vector.shape_cast %40 : vector<1x128xf32> to vector<1x1x128xf32>
    tpu.vector_store %arg10[%c0_21, %c0_22, %c0_23], %43 {strides = array<i32>} : memref<1x1x128xf32, #tpu.memory_space<vmem>>, vector<1x1x128xf32>,
    %c0_24 = arith.constant 0 : index
    %c0_25 = arith.constant 0 : index
    %44 = vector.load %arg11[%c0_24, %c0_25] : memref<1x1xf32, #tpu.memory_space<vmem>>, vector<1x1xf32>
    %cst_26 = arith.constant dense<0xFF800000> : vector<1xf32>
    %45 = vector.multi_reduction <maximumf>, %40, %cst_26 [1] : vector<1x128xf32> to vector<1xf32>
    %46 = vector.shape_cast %45 : vector<1xf32> to vector<1x1xf32>
    %47 = arith.maximumf %44, %46 : vector<1x1xf32>
    %48 = arith.subf %44, %47 : vector<1x1xf32>
    %49 = math.exp %48 : vector<1x1xf32>
    %50 = vector.broadcast %47 : vector<1x1xf32> to vector<1x128xf32>
    %51 = arith.subf %40, %50 : vector<1x128xf32>
    %52 = math.exp %51 : vector<1x128xf32>
    %c0_27 = arith.constant 0 : index
    %c0_28 = arith.constant 0 : index
    %53 = vector.load %arg12[%c0_27, %c0_28] : memref<1x1xf32, #tpu.memory_space<vmem>>, vector<1x1xf32>
    %54 = arith.mulf %49, %53 : vector<1x1xf32>
    %cst_29 = arith.constant dense<0.000000e+00> : vector<1xf32>
    %55 = vector.multi_reduction <add>, %52, %cst_29 [1] : vector<1x128xf32> to vector<1xf32>
    %56 = vector.shape_cast %55 : vector<1xf32> to vector<1x1xf32>
    %57 = arith.addf %54, %56 : vector<1x1xf32>
    %c0_30 = arith.constant 0 : index
    %c0_31 = arith.constant 0 : index
    %58 = vector.load %arg12[%c0_30, %c0_31] : memref<1x1xf32, #tpu.memory_space<vmem>>, vector<1x1xf32>
    tpu.vector_store %arg12[%c0_30, %c0_31], %57 {strides = array<i32>} : memref<1x1xf32, #tpu.memory_space<vmem>>, vector<1x1xf32>,
    %c0_32 = arith.constant 0 : index
    %c0_33 = arith.constant 0 : index
    %59 = vector.load %arg9[%c0_32, %c0_33] : memref<1x128xf32, #tpu.memory_space<vmem>>, vector<1x128xf32>
    %60 = vector.broadcast %49 : vector<1x1xf32> to vector<1x128xf32>
    %61 = arith.mulf %60, %59 : vector<1x128xf32>
    %cst_34 = arith.constant dense<0.000000e+00> : vector<1x128xf32>
    %62 = tpu.matmul %52, %21, %cst_34 {dimension_numbers = #tpu.dot_dimension_numbers<[1], [0], [0], [1], [0, 0, 1, 1], [], []>} : vector<1x128xf32>, vector<128x128xf32>, vector<1x128xf32> -> vector<1x128xf32>
    %63 = arith.addf %61, %62 : vector<1x128xf32>
    %c0_35 = arith.constant 0 : index
    %c0_36 = arith.constant 0 : index
    %64 = vector.load %arg9[%c0_35, %c0_36] : memref<1x128xf32, #tpu.memory_space<vmem>>, vector<1x128xf32>
    tpu.vector_store %arg9[%c0_35, %c0_36], %63 {strides = array<i32>} : memref<1x128xf32, #tpu.memory_space<vmem>>, vector<1x128xf32>,
    %c0_37 = arith.constant 0 : index
    %c0_38 = arith.constant 0 : index
    %65 = vector.load %arg11[%c0_37, %c0_38] : memref<1x1xf32, #tpu.memory_space<vmem>>, vector<1x1xf32>
    tpu.vector_store %arg11[%c0_37, %c0_38], %47 {strides = array<i32>} : memref<1x1xf32, #tpu.memory_space<vmem>>, vector<1x1xf32>,
    %c1_i32 = arith.constant 1 : i32
    %66 = arith.cmpi eq, %arg0, %c1_i32 : i32
    %67 = arith.extui %66 : i1 to i32
    %c0_i32_39 = arith.constant 0 : i32
    %68 = arith.cmpi ne, %67, %c0_i32_39 : i32
    scf.if %68 {
      %c0_40 = arith.constant 0 : index
      %c0_41 = arith.constant 0 : index
      %69 = vector.load %arg9[%c0_40, %c0_41] : memref<1x128xf32, #tpu.memory_space<vmem>>, vector<1x128xf32>
      %c0_42 = arith.constant 0 : index
      %c0_43 = arith.constant 0 : index
      %70 = vector.load %arg12[%c0_42, %c0_43] : memref<1x1xf32, #tpu.memory_space<vmem>>, vector<1x1xf32>
      %71 = vector.broadcast %70 : vector<1x1xf32> to vector<1x128xf32>
      %72 = arith.divf %69, %71 : vector<1x128xf32>
      %c0_44 = arith.constant 0 : index
      %c0_45 = arith.constant 0 : index
      %73 = vector.load %arg9[%c0_44, %c0_45] : memref<1x128xf32, #tpu.memory_space<vmem>>, vector<1x128xf32>
      tpu.vector_store %arg9[%c0_44, %c0_45], %72 {strides = array<i32>} : memref<1x128xf32, #tpu.memory_space<vmem>>, vector<1x128xf32>,
    } else {
    }
    return
  }
  func.func @transform_0(%arg0: i32, %arg1: memref<1xi32, #tpu.memory_space<smem>>) -> (i32, i32) {
    %c0_i32 = arith.constant 0 : i32
    %c0_i32_0 = arith.constant 0 : i32
    return %arg0, %c0_i32 : i32, i32
  }
  func.func @transform_1(%arg0: i32, %arg1: memref<1xi32, #tpu.memory_space<smem>>) -> (i32, i32) {
    %c0_i32 = arith.constant 0 : i32
    %c0_i32_0 = arith.constant 0 : i32
    %c0_i32_1 = arith.constant 0 : i32
    return %c0_i32, %c0_i32_0 : i32, i32
  }
  func.func @transform_2(%arg0: i32, %arg1: memref<1xi32, #tpu.memory_space<smem>>) -> (i32, i32) {
    %c0_i32 = arith.constant 0 : i32
    %c0_i32_0 = arith.constant 0 : i32
    %c0_i32_1 = arith.constant 0 : i32
    return %c0_i32, %c0_i32_0 : i32, i32
  }
  func.func @transform_3(%arg0: i32, %arg1: memref<1xi32, #tpu.memory_space<smem>>) -> (i32, i32) {
    %c0_i32 = arith.constant 0 : i32
    %c0_i32_0 = arith.constant 0 : i32
    %c0_i32_1 = arith.constant 0 : i32
    return %c0_i32, %c0_i32_0 : i32, i32
  }
  func.func @transform_4(%arg0: i32, %arg1: memref<1xi32, #tpu.memory_space<smem>>) -> (i32, i32) {
    %c0_i32 = arith.constant 0 : i32
    %c0_i32_0 = arith.constant 0 : i32
    %c0_i32_1 = arith.constant 0 : i32
    return %c0_i32, %c0_i32_0 : i32, i32
  }
  func.func @transform_5(%arg0: i32, %arg1: memref<1xi32, #tpu.memory_space<smem>>) -> (i32, i32) {
    %c0_i32 = arith.constant 0 : i32
    %c0_i32_0 = arith.constant 0 : i32
    %c0_i32_1 = arith.constant 0 : i32
    return %c0_i32, %c0_i32_0 : i32, i32
  }
  func.func @transform_6(%arg0: i32, %arg1: memref<1xi32, #tpu.memory_space<smem>>) -> (i32, i32) {
    %c0_i32 = arith.constant 0 : i32
    %c0_i32_0 = arith.constant 0 : i32
    %c0_i32_1 = arith.constant 0 : i32
    return %c0_i32, %c0_i32_0 : i32, i32
  }
  func.func @transform_7(%arg0: i32, %arg1: memref<1xi32, #tpu.memory_space<smem>>) -> (i32, i32) {
    %c0_i32 = arith.constant 0 : i32
    %c0_i32_0 = arith.constant 0 : i32
    %c0_i32_1 = arith.constant 0 : i32
    return %c0_i32, %c0_i32_0 : i32, i32
  }
  func.func @transform_8(%arg0: i32, %arg1: memref<1xi32, #tpu.memory_space<smem>>) -> (i32, i32, i32) {
    %c0_i32 = arith.constant 0 : i32
    %c0_i32_0 = arith.constant 0 : i32
    %c0_i32_1 = arith.constant 0 : i32
    return %arg0, %c0_i32, %c0_i32_0 : i32, i32, i32
  }
}

</mosaic_0001>

<bundles_post_ra>
// kernel: tpu_custom_call.1
= control target key start
LH: loop header
LB: loop body
LE: loop exit
PB: predicated region body
PF: predicated region fallthrough
CT: control target
= control target key end

     0   :  { %s2306_s0 = inlined_call_operand.<no memory space> [shape: s32[1], index: 0, kind: input, shape index: {}]   ;;  %s2307_s1 = inlined_call_operand.vmem [shape: f32[200,96], index: 1, kind: input, shape index: {}]   ;;  %s2308_s2 = inlined_call_operand.vmem [shape: f32[96,128], index: 2, kind: input, shape index: {}]   ;;  %s2309_s3 = inlined_call_operand.vmem [shape: f32[1,128], index: 3, kind: input, shape index: {}]   ;;  %s2310_s4 = inlined_call_operand.vmem [shape: f32[128,128], index: 4, kind: input, shape index: {}]   ;;  %s2311_s5 = inlined_call_operand.vmem [shape: f32[1,128], index: 5, kind: input, shape index: {}]   ;;  %s2312_s6 = inlined_call_operand.vmem [shape: f32[1,128], index: 6, kind: input, shape index: {}]   ;;  %s2313_s7 = inlined_call_operand.<no memory space> [shape: f32[1,1], index: 7, kind: input, shape index: {}]   ;;  %s2314_s8 = inlined_call_operand.hbm [shape: f32[1,128], index: 8, kind: output, shape index: {0}]   ;;  %s2315_s9 = inlined_call_operand.hbm [shape: f32[2,1,128], index: 9, kind: output, shape index: {1}]  }
   0x1   :  { %15 = sst [smem:[#allocation5]] %s2306_s0 }
   0x2   :  { %16 = sst [smem:[#allocation6]] %s2313_s7 }
   0x3   :  { %17 = vsyncpa [#allocation8], 0 }
   0x4   :  { %18 = vsyncpa [#allocation10], 0 }
   0x5   :  { %20 = vsyncpa [#allocation10 + $0x1], 0  ;;  %s1746_s13 = smov 0   ;;  %s1748_s14 = smov 0  }
   0x6   :  { %s1750_s15 = smov 0   ;;  %s1752_s16 = smov 0  }
   0x7 LB: > { %s1767_s0 = sadd.s32 4294967295, %s1680_s16   ;;  %s1167_s7 = sadd.s32 4294967294, %s1680_s16   ;;  %s1680_s16 = sphi %s1752_s16, %s2323_s16   ;;  %s1676_s15 = sphi %s1750_s15, %s2322_s15   ;;  %s1672_s14 = sphi %s1748_s14, %s2321_s14   ;;  %s1668_s13 = sphi %s1746_s13, %s2320_s13  }
   0x8   : > { %s1771_s17 = sadd.s32 1, %s1680_s16   ;;  %s206_s18 = sadd.s32 1, %s1676_s15 }
   0x9   : > { %s203_s19 = ssub.s32 %s1680_s16, %s1771_s17  ;;  %p216_p0 = scmp.ne.s32.totalorder %s1676_s15, %s1672_s14 }
   0xa   : > { %p204_p1 = scmp.eq.s32.totalorder %s203_s19, 0  ;;  %p217_p2 = scmp.eq.s32.totalorder %s1767_s0, 1 }
   0xb   : > { %p222_p3 = scmp.ne.s32.totalorder %s1672_s14, %s1668_s13  ;;  %p223_p4 = scmp.eq.s32.totalorder %s1167_s7, 1 }
   0xc   : > { %s1782_s20 = scalar_select %p204_p1, %s1676_s15, %s206_s18  }
   0xd   : > { %p1786_p5 = por %p217_p2, %p216_p0  ;;  %p1790_p6 = por %p223_p4, %p222_p3 }
   0xe   : > { %p1170_p7 = scmp.ge.s32.totalorder %s1680_s16, 1  ;;  %p276_p8 = scmp.lt.s32.totalorder %s1680_s16, 3 }
  0x10   : > { %p277_p9 = pnand %p1170_p7, %p276_p8 }
  0x11   : > { %s2316_s23 = sand.u32 (!%p277_p9), 1, %s1672_s14   ;;  %s1798_s24 = sshll.u32 (!%p277_p9), %s1767_s0, 4 }
  0x12   : > { %280 = sbr.rel (%p277_p9) target bundleno = 1417 (0x589), region = 48  ;;  %p318_p10 = scmp.lt.s32.totalorder (!%p277_p9), %s1798_s24, 24 }
  0x13   : > { %s1801_s25 = sld [smem:[#allocation5]] (!%p277_p9)  ;;  %s1811_s10 = scalar_lea.vmem (!%p277_p9), [#allocation9], %s2316_s23 }
  0x14   : > { %p1173_p11 = scmp.ne.s32.totalorder (!%p277_p9), %s1767_s0, 0 }
  0x17   : > { %s319_s26 = scalar_select %p318_p10, %s1798_s24, 24 }
  0x18   : > { %331 = sbr.rel (%p1173_p11) target bundleno = 32 (0x20), region = 52 }
  0x19   : > { %s1172_s27 = sshll.u32 %s319_s26, 3 }
  0x1a   : > { %s1807_s30 = scalar_lea.vmem %s2307_s1, %s1172_s27 }
  0x1d   : > { %vm332_vm0 = vcmask 0   ;;  %v1682_v0 = vmov -1e+30   ;;  %v1683_v1 = vmov 0.0  }
  0x1e   : > { %333 = vst.msk [vmem:[#allocation2] sm:$0x1] %vm332_vm0, %v1682_v0  ;;  %334 = vst.msk [vmem:[#allocation3] sm:$0x1] %vm332_vm0, %v1683_v1 }
  0x1f   : > { %335 = vst [vmem:[#allocation7] sm:$0x1] %v1683_v1 }
  0x20 PF: > { %v415_v2 = vld [vmem:[%s2308_s2 + $0x58] sm:$0xff]  ;;  %v414_v3 = vld [vmem:[%s2308_s2 + $0x50] sm:$0xff]  ;;  %v413_v4 = vld [vmem:[%s2308_s2 + $0x48] sm:$0xff]  ;;  %vm423_vm1 = vcmask 785408   ;;  %v1684_v46 = vmov 0.0   ;;  %v337_v47 = vlaneseq  ;;  %s1174_s26 = sshll.u32 %s1767_s0, 7  ;;  %v1950_v55 = vstv %s1801_s25 }
  0x21   : > { %1325 = vmatprep.subr.mxu0 %v415_v2  ;;  %v412_v5 = vld [vmem:[%s2308_s2 + $0x40] sm:$0xff]  ;;  %v411_v7 = vld [vmem:[%s2308_s2 + $0x38] sm:$0xff]  ;;  %v410_v8 = vld [vmem:[%s2308_s2 + $0x30] sm:$0xff]  ;;  %v1936_v49 = vstv %s1174_s26  ;;  %s866_s7 = sld [smem:[#allocation6]]  ;;  %p1225_p12 = scmp.ne.s32.totalorder %s1767_s0, 1 }
  0x22   : > { %1326 = vmatpush3.msra.mxu0 %v415_v2  ;;  %v388_v6 = vld [vmem:[%s1807_s30] sm:$0xff]  ;;  %v696_v9 = vld [vmem:[%s2310_s4 + $0x78] sm:$0xff]  ;;  %v695_v10 = vld [vmem:[%s2310_s4 + $0x70] sm:$0xff]  ;;  %v1933_v48 = vshrl.u32 %v337_v47, 7 }
  0x23   : > { %1327 = vmatprep.subr.mxu0 %v414_v3  ;;  %1349 = vmatprep.mubr.msk.f32.mxu0 %vm423_vm1, %v388_v6  ;;  %v409_v11 = vld [vmem:[%s2308_s2 + $0x28] sm:$0xff]  ;;  %v408_v13 = vld [vmem:[%s2308_s2 + $0x20] sm:$0xff]  ;;  %v407_v15 = vld [vmem:[%s2308_s2 + $0x18] sm:$0xff] }
  0x24   : > { %1328 = vmatpush3.msra.mxu0 %v414_v3  ;;  %1373 = vmatprep.subr.mxu1 %v696_v9  ;;  %v694_v12 = vld [vmem:[%s2310_s4 + $0x68] sm:$0xff]  ;;  %v693_v14 = vld [vmem:[%s2310_s4 + $0x60] sm:$0xff]  ;;  %v692_v16 = vld [vmem:[%s2310_s4 + $0x58] sm:$0xff]  ;;  %v339_v50 = vadd.s32 8, %v1933_v48  ;;  %v1946_v53 = vadd.s32 %v1936_v49, %v1933_v48  ;;  %v340_v54 = vadd.s32 16, %v1933_v48  ;;  %v341_v57 = vadd.s32 24, %v1933_v48 }
  0x25   : > { %1329 = vmatprep.subr.mxu0 %v413_v4  ;;  %1374 = vmatpush3.msra.mxu1 %v696_v9  ;;  %v406_v17 = vld [vmem:[%s2308_s2 + $0x10] sm:$0xff]  ;;  %v405_v19 = vld [vmem:[%s2308_s2 + $0x8] sm:$0xff]  ;;  %v404_v21 = vld [vmem:[%s2308_s2] sm:$0xff]  ;;  %v342_v63 = vadd.s32 32, %v1933_v48  ;;  %v343_v2 = vadd.s32 40, %v1933_v48  ;;  %v344_v9 = vadd.s32 48, %v1933_v48 }
  0x26   : > { %1330 = vmatpush3.msra.mxu0 %v413_v4  ;;  %1375 = vmatprep.subr.mxu1 %v695_v10  ;;  %v691_v18 = vld [vmem:[%s2310_s4 + $0x50] sm:$0xff]  ;;  %v690_v20 = vld [vmem:[%s2310_s4 + $0x48] sm:$0xff]  ;;  %v689_v22 = vld [vmem:[%s2310_s4 + $0x40] sm:$0xff]  ;;  %v1953_v56 = vadd.s32 %v1936_v49, %v339_v50  ;;  %vm372_vm2 = vcmp.lt.s32.totalorder %v1946_v53, %v1950_v55  ;;  %v1965_v62 = vadd.s32 %v1936_v49, %v340_v54  ;;  %v353_v50 = vadd.s32 120, %v1933_v48 }
  0x27   : > { %1331 = vmatprep.subr.mxu0 %v412_v5  ;;  %1376 = vmatpush3.msra.mxu1 %v695_v10  ;;  %v389_v23 = vld [vmem:[%s1807_s30 + $0x8] sm:$0xff]  ;;  %v390_v24 = vld [vmem:[%s1807_s30 + $0x10] sm:$0xff]  ;;  %v688_v25 = vld [vmem:[%s2310_s4 + $0x38] sm:$0xff]  ;;  %v1972_v1 = vadd.s32 %v1936_v49, %v341_v57 }
  0x28   : > { %1332 = vmatpush3.msra.mxu0 %v412_v5  ;;  %1377 = vmatprep.subr.mxu1 %v694_v12  ;;  %v687_v26 = vld [vmem:[%s2310_s4 + $0x30] sm:$0xff]  ;;  %v391_v27 = vld [vmem:[%s1807_s30 + $0x18] sm:$0xff]  ;;  %v392_v28 = vld [vmem:[%s1807_s30 + $0x20] sm:$0xff]  ;;  %vm373_vm3 = vcmp.lt.s32.totalorder %v1953_v56, %v1950_v55  ;;  %vm374_vm4 = vcmp.lt.s32.totalorder %v1965_v62, %v1950_v55 }
  0x29   : > { %1333 = vmatprep.subr.mxu0 %v411_v7  ;;  %1378 = vmatpush3.msra.mxu1 %v694_v12  ;;  %v686_v29 = vld [vmem:[%s2310_s4 + $0x28] sm:$0xff]  ;;  %v685_v30 = vld [vmem:[%s2310_s4 + $0x20] sm:$0xff]  ;;  %v394_v32 = vld [vmem:[%s1807_s30 + $0x30] sm:$0xff]  ;;  %vm375_vm5 = vcmp.lt.s32.totalorder %v1972_v1, %v1950_v55  ;;  %v345_v12 = vadd.s32 56, %v1933_v48 }
  0x2a   : > { %1334 = vmatpush3.msra.mxu0 %v411_v7  ;;  %1379 = vmatprep.subr.mxu1 %v693_v14  ;;  %v393_v31 = vld [vmem:[%s1807_s30 + $0x28] sm:$0xff]  ;;  %v395_v33 = vld [vmem:[%s1807_s30 + $0x38] sm:$0xff]  ;;  %v396_v34 = vld [vmem:[%s1807_s30 + $0x40] sm:$0xff] }
  0x2b   : > { %1335 = vmatprep.subr.mxu0 %v410_v8  ;;  %1380 = vmatpush3.msra.mxu1 %v693_v14  ;;  %v397_v35 = vld [vmem:[%s1807_s30 + $0x48] sm:$0xff]  ;;  %v398_v36 = vld [vmem:[%s1807_s30 + $0x50] sm:$0xff]  ;;  %v399_v37 = vld [vmem:[%s1807_s30 + $0x58] sm:$0xff] }
  0x2c   : > { %1336 = vmatpush3.msra.mxu0 %v410_v8  ;;  %1381 = vmatprep.subr.mxu1 %v692_v16  ;;  %v400_v38 = vld [vmem:[%s1807_s30 + $0x60] sm:$0xff]  ;;  %v401_v39 = vld [vmem:[%s1807_s30 + $0x68] sm:$0xff]  ;;  %v402_v40 = vld [vmem:[%s1807_s30 + $0x70] sm:$0xff]  ;;  %v1995_v8 = vadd.s32 %v1936_v49, %v342_v63 }
  0x2d   : > { %1337 = vmatprep.subr.mxu0 %v409_v11  ;;  %1382 = vmatpush3.msra.mxu1 %v692_v16  ;;  %v403_v41 = vld [vmem:[%s1807_s30 + $0x78] sm:$0xff]  ;;  %v683_v43 = vld [vmem:[%s2310_s4 + $0x10] sm:$0xff]  ;;  %v682_v44 = vld [vmem:[%s2310_s4 + $0x8] sm:$0xff] }
  0x2e   : > { %1338 = vmatpush3.msra.mxu0 %v409_v11  ;;  %1383 = vmatprep.subr.mxu1 %v691_v18  ;;  %v684_v42 = vld [vmem:[%s2310_s4 + $0x18] sm:$0xff]  ;;  %v681_v45 = vld [vmem:[%s2310_s4] sm:$0xff]  ;;  %v2002_v11 = vadd.s32 %v1936_v49, %v343_v2  ;;  %vm376_vm6 = vcmp.lt.s32.totalorder %v1995_v8, %v1950_v55 }
  0x2f   : > { %1339 = vmatprep.subr.mxu0 %v408_v13  ;;  %1384 = vmatpush3.msra.mxu1 %v691_v18  ;;  %v1942_v51 = vld [vmem:[%s2309_s3] ss:$0 sm:$0xff]  ;;  %v2025_v18 = vadd.s32 %v1936_v49, %v344_v9  ;;  %v370_v9 = vadd.s32 %v1936_v49, %v353_v50 }
  0x30   : > { %1340 = vmatpush3.msra.mxu0 %v408_v13  ;;  %1385 = vmatprep.subr.mxu1 %v690_v20  ;;  %vm377_vm7 = vcmp.lt.s32.totalorder %v2002_v11, %v1950_v55 }
  0x31   : > { %1341 = vmatprep.subr.mxu0 %v407_v15  ;;  %1386 = vmatpush3.msra.mxu1 %v690_v20  ;;  %vm378_vm8 = vcmp.lt.s32.totalorder %v2025_v18, %v1950_v55  ;;  %vm387_vm0 = vcmp.lt.s32.totalorder %v370_v9, %v1950_v55 }
  0x32   : > { %1342 = vmatpush3.msra.mxu0 %v407_v15  ;;  %1387 = vmatprep.subr.mxu1 %v689_v22 }
  0x33   : > { %1343 = vmatprep.subr.mxu0 %v406_v17  ;;  %1388 = vmatpush3.msra.mxu1 %v689_v22  ;;  %v347_v22 = vadd.s32 72, %v1933_v48 }
  0x34   : > { %1344 = vmatpush3.msra.mxu0 %v406_v17  ;;  %1389 = vmatprep.subr.mxu1 %v688_v25 }
  0x35   : > { %1345 = vmatprep.subr.mxu0 %v405_v19  ;;  %1390 = vmatpush3.msra.mxu1 %v688_v25 }
  0x36   : > { %1346 = vmatpush3.msra.mxu0 %v405_v19  ;;  %1391 = vmatprep.subr.mxu1 %v687_v26  ;;  %v346_v19 = vadd.s32 64, %v1933_v48 }
  0x37   : > { %1347 = vmatprep.subr.mxu0 %v404_v21  ;;  %1392 = vmatpush3.msra.mxu1 %v687_v26 }
  0x38   : > { %1348 = vmatpush3.msra.mxu0 %v404_v21  ;;  %1393 = vmatprep.subr.mxu1 %v686_v29  ;;  %v2032_v21 = vadd.s32 %v1936_v49, %v345_v12 }
  0x39   : > { %1350 = vmatmul.mubr.msk.f32.vlgmr.msra.gmra.mxu0 %vm423_vm1, %v389_v23  ;;  %1394 = vmatpush3.msra.mxu1 %v686_v29  ;;  %v348_v29 = vadd.s32 80, %v1933_v48 }
  0x3a   : > { %1352 = vmatprep.mubr.msk.f32.mxu0 %vm423_vm1, %v390_v24  ;;  %1395 = vmatprep.subr.mxu1 %v685_v30  ;;  %vm379_vm9 = vcmp.lt.s32.totalorder %v2032_v21, %v1950_v55 }
  0x3b   : > { %1396 = vmatpush3.msra.mxu1 %v685_v30  ;;  %1429 = vmatprep.subr.mxu0 %v1684_v46 }
  0x3c   : > { %1397 = vmatprep.subr.mxu1 %v684_v42 }
  0x3d   : > { %1353 = vmatmul.mubr.msk.f32.gmra.mxu0 %vm423_vm1, %v391_v27  ;;  %1398 = vmatpush3.msra.mxu1 %v684_v42  ;;  %v351_v42 = vadd.s32 104, %v1933_v48 }
  0x3e   : > { %1355 = vmatprep.mubr.msk.f32.mxu0 %vm423_vm1, %v392_v28  ;;  %1399 = vmatprep.subr.mxu1 %v683_v43  ;;  %v2055_v28 = vadd.s32 %v1936_v49, %v346_v19 }
  0x3f   : > { %1400 = vmatpush3.msra.mxu1 %v683_v43  ;;  %v368_v63 = vadd.s32 %v1936_v49, %v351_v42 }
  0x40   : > { %1401 = vmatprep.subr.mxu1 %v682_v44  ;;  %vm380_vm10 = vcmp.lt.s32.totalorder %v2055_v28, %v1950_v55 }
  0x41   : > { %1356 = vmatmul.mubr.msk.f32.gmra.mxu0 %vm423_vm1, %v393_v31  ;;  %1402 = vmatpush3.msra.mxu1 %v682_v44  ;;  %v2062_v31 = vadd.s32 %v1936_v49, %v347_v22  ;;  %vm385_vm15 = vcmp.lt.s32.totalorder %v368_v63, %v1950_v55 }
  0x42   : > { %1358 = vmatprep.mubr.msk.f32.mxu0 %vm423_vm1, %v394_v32  ;;  %1403 = vmatprep.subr.mxu1 %v681_v45  ;;  %v349_v32 = vadd.s32 88, %v1933_v48 }
  0x43   : > { %1404 = vmatpush3.msra.mxu1 %v681_v45  ;;  %vm381_vm11 = vcmp.lt.s32.totalorder %v2062_v31, %v1950_v55 }
  0x44   : > { %1464 = vmatprep.subr.mxu1 %v1684_v46 }
  0x45   : > { %1359 = vmatmul.mubr.msk.f32.gmra.mxu0 %vm423_vm1, %v395_v33 }
  0x46   : > { %1361 = vmatprep.mubr.msk.f32.mxu0 %vm423_vm1, %v396_v34 }
  0x49   : > { %1362 = vmatmul.mubr.msk.f32.gmra.mxu0 %vm423_vm1, %v397_v35 }
  0x4a   : > { %1364 = vmatprep.mubr.msk.f32.mxu0 %vm423_vm1, %v398_v36 }
  0x4d   : > { %1365 = vmatmul.mubr.msk.f32.gmra.mxu0 %vm423_vm1, %v399_v37 }
  0x4e   : > { %1367 = vmatprep.mubr.msk.f32.mxu0 %vm423_vm1, %v400_v38  ;;  %v365_v38 = vadd.s32 %v1936_v49, %v348_v29 }
  0x50   : > { %vm382_vm12 = vcmp.lt.s32.totalorder %v365_v38, %v1950_v55 }
  0x51   : > { %1368 = vmatmul.mubr.msk.f32.gmra.mxu0 %vm423_vm1, %v401_v39  ;;  %v350_v39 = vadd.s32 96, %v1933_v48 }
  0x52   : > { %1370 = vmatprep.mubr.msk.f32.mxu0 %vm423_vm1, %v402_v40 }
  0x53   : > { %v367_v57 = vadd.s32 %v1936_v49, %v350_v39 }
  0x55   : > { %1371 = vmatmul.mubr.msk.f32.gmra.mxu0 %vm423_vm1, %v403_v41  ;;  %v366_v41 = vadd.s32 %v1936_v49, %v349_v32  ;;  %vm384_vm14 = vcmp.lt.s32.totalorder %v367_v57, %v1950_v55 }
  0x57   : > { %vm383_vm13 = vcmp.lt.s32.totalorder %v366_v41, %v1950_v55 }
  0xf9   : > { %v1351_v52 = vpop.f32.mrf.mxu0 }
  0xfa   : > { %v1957_v58 = vadd.f32 %v1351_v52, %v1942_v51 }
  0xfb   : > { %v538_v59 = vpop.f32.mrf.mxu0 }
  0xfc   : > { %v1960_v60 = vadd.f32 %v1942_v51, %v538_v59  ;;  %v618_v3 = vmax.f32 %v1957_v58, 0.0  ;;  %v352_v59 = vadd.s32 112, %v1933_v48 }
  0xfd   : > { %v1354_v61 = vpop.f32.mrf.mxu0 }
  0xfe   : > { %v617_v0 = vmax.f32 %v1960_v60, 0.0  ;;  %v1977_v4 = vadd.f32 %v1354_v61, %v1942_v51 }
  0xff   : > { %v548_v5 = vpop.f32.mrf.mxu0 }
 0x100   : > { %v1980_v6 = vadd.f32 %v1942_v51, %v548_v5  ;;  %1405 = vmatprep.mubr.msk.f32.mxu1 %vm372_vm2, %v617_v0  ;;  %v620_v13 = vmax.f32 %v1977_v4, 0.0 }
 0x101   : > { %v1357_v7 = vpop.f32.mrf.mxu0  ;;  %1406 = vmatmul.mubr.msk.f32.vlgmr.msra.gmra.mxu1 %vm373_vm3, %v618_v3 }
 0x102   : > { %v619_v10 = vmax.f32 %v1980_v6, 0.0  ;;  %v2007_v14 = vadd.f32 %v1357_v7, %v1942_v51 }
 0x103   : > { %v558_v15 = vpop.f32.mrf.mxu0 }
 0x104   : > { %v2010_v16 = vadd.f32 %v1942_v51, %v558_v15  ;;  %1408 = vmatprep.mubr.msk.f32.mxu1 %vm374_vm4, %v619_v10  ;;  %v622_v23 = vmax.f32 %v2007_v14, 0.0 }
 0x105   : > { %v1360_v17 = vpop.f32.mrf.mxu0  ;;  %1409 = vmatmul.mubr.msk.f32.gmra.mxu1 %vm375_vm5, %v620_v13 }
 0x106   : > { %v621_v20 = vmax.f32 %v2010_v16, 0.0  ;;  %v2037_v24 = vadd.f32 %v1360_v17, %v1942_v51  ;;  %v369_v17 = vadd.s32 %v1936_v49, %v352_v59 }
 0x107   : > { %v568_v25 = vpop.f32.mrf.mxu0 }
 0x108   : > { %v2040_v26 = vadd.f32 %v1942_v51, %v568_v25  ;;  %1411 = vmatprep.mubr.msk.f32.mxu1 %vm376_vm6, %v621_v20  ;;  %v624_v33 = vmax.f32 %v2037_v24, 0.0  ;;  %vm386_vm1 = vcmp.lt.s32.totalorder %v369_v17, %v1950_v55 }
 0x109   : > { %v1363_v27 = vpop.f32.mrf.mxu0  ;;  %1412 = vmatmul.mubr.msk.f32.gmra.mxu1 %vm377_vm7, %v622_v23 }
 0x10a   : > { %v623_v30 = vmax.f32 %v2040_v26, 0.0  ;;  %v2067_v34 = vadd.f32 %v1363_v27, %v1942_v51 }
 0x10b   : > { %v578_v35 = vpop.f32.mrf.mxu0 }
 0x10c   : > { %v2070_v36 = vadd.f32 %v1942_v51, %v578_v35  ;;  %1414 = vmatprep.mubr.msk.f32.mxu1 %vm378_vm8, %v623_v30  ;;  %v626_v43 = vmax.f32 %v2067_v34, 0.0 }
 0x10d   : > { %v1366_v37 = vpop.f32.mrf.mxu0  ;;  %1415 = vmatmul.mubr.msk.f32.gmra.mxu1 %vm379_vm9, %v624_v33 }
 0x10e   : > { %v625_v40 = vmax.f32 %v2070_v36, 0.0  ;;  %v594_v44 = vadd.f32 %v1366_v37, %v1942_v51 }
 0x10f   : > { %v588_v45 = vpop.f32.mrf.mxu0 }
 0x110   : > { %v589_v52 = vadd.f32 %v1942_v51, %v588_v45  ;;  %1417 = vmatprep.mubr.msk.f32.mxu1 %vm380_vm10, %v625_v40  ;;  %v628_v2 = vmax.f32 %v594_v44, 0.0 }
 0x111   : > { %v1369_v54 = vpop.f32.mrf.mxu0  ;;  %1418 = vmatmul.mubr.msk.f32.gmra.mxu1 %vm381_vm11, %v626_v43 }
 0x112   : > { %v627_v61 = vmax.f32 %v589_v52, 0.0  ;;  %v604_v5 = vadd.f32 %v1369_v54, %v1942_v51 }
 0x113   : > { %v598_v7 = vpop.f32.mrf.mxu0 }
 0x114   : > { %v599_v12 = vadd.f32 %v1942_v51, %v598_v7  ;;  %1420 = vmatprep.mubr.msk.f32.mxu1 %vm382_vm12, %v627_v61  ;;  %v630_v25 = vmax.f32 %v604_v5, 0.0 }
 0x115   : > { %v1372_v15 = vpop.f32.mrf.mxu0  ;;  %1421 = vmatmul.mubr.msk.f32.gmra.mxu1 %vm383_vm13, %v628_v2 }
 0x116   : > { %v629_v19 = vmax.f32 %v599_v12, 0.0  ;;  %v614_v22 = vadd.f32 %v1372_v15, %v1942_v51  ;;  %v865_v12 = vld [vmem:[%s2312_s6] sm:$0x1]  ;;  %v939_v15 = vand.u32 127, %v337_v47 }
 0x117   : > { %v608_v27 = vpop.f32.mrf.mxu0 }
 0x118   : > { %v632_v29 = vmax.f32 %v614_v22, 0.0  ;;  %v609_v32 = vadd.f32 %v1942_v51, %v608_v27  ;;  %1423 = vmatprep.mubr.msk.f32.mxu1 %vm384_vm14, %v629_v19  ;;  %v940_v17 = vadd.s32 %v939_v15, %v1936_v49 }
 0x119   : > { %1424 = vmatmul.mubr.msk.f32.gmra.mxu1 %vm385_vm15, %v630_v25 }
 0x11a   : > { %v631_v34 = vmax.f32 %v609_v32, 0.0  ;;  %1465 = vmatpush3.msk.msra.mxu1 %vm387_vm0, %v632_v29  ;;  %v1686_v32 = vmov 0  }
 0x11b   : > { %1466 = vmatprep.subr.mxu1 %v1684_v46  ;;  %1551 = vset.pattern.permute.xlu0 %v1686_v32 }
 0x11c   : > { %1426 = vmatprep.mubr.msk.f32.mxu1 %vm386_vm1, %v631_v34  ;;  %1467 = vmatpush3.msk.msra.mxu1 %vm386_vm1, %v631_v34  ;;  %v944_v34 = vld [vmem:[#allocation2] sm:$0x1] }
 0x11d   : > { %1427 = vmatmul.mubr.msk.f32.gmra.mxu1 %vm387_vm0, %v632_v29  ;;  %1468 = vmatprep.subr.mxu1 %v1684_v46 }
 0x11e   : > { %1469 = vmatpush3.msk.msra.mxu1 %vm385_vm15, %v630_v25  ;;  %1552 = vset.pattern.permute.xlu1 %v1686_v32 }
 0x11f   : > { %1470 = vmatprep.subr.mxu1 %v1684_v46 }
 0x120   : > { %1471 = vmatpush3.msk.msra.mxu1 %vm384_vm14, %v629_v19  ;;  %v867_v19 = vstv %s866_s7 }
 0x121   : > { %1472 = vmatprep.subr.mxu1 %v1684_v46 }
 0x122   : > { %1473 = vmatpush3.msk.msra.mxu1 %vm383_vm13, %v628_v2 }
 0x123   : > { %1474 = vmatprep.subr.mxu1 %v1684_v46 }
 0x124   : > { %1475 = vmatpush3.msk.msra.mxu1 %vm382_vm12, %v627_v61 }
 0x125   : > { %1476 = vmatprep.subr.mxu1 %v1684_v46 }
 0x126   : > { %1477 = vmatpush3.msk.msra.mxu1 %vm381_vm11, %v626_v43 }
 0x127   : > { %1478 = vmatprep.subr.mxu1 %v1684_v46 }
 0x128   : > { %1479 = vmatpush3.msk.msra.mxu1 %vm380_vm10, %v625_v40 }
 0x129   : > { %1480 = vmatprep.subr.mxu1 %v1684_v46 }
 0x12a   : > { %1481 = vmatpush3.msk.msra.mxu1 %vm379_vm9, %v624_v33 }
 0x12b   : > { %1482 = vmatprep.subr.mxu1 %v1684_v46 }
 0x12c   : > { %1483 = vmatpush3.msk.msra.mxu1 %vm378_vm8, %v623_v30 }
 0x12d   : > { %1484 = vmatprep.subr.mxu1 %v1684_v46 }
 0x12e   : > { %1485 = vmatpush3.msk.msra.mxu1 %vm377_vm7, %v622_v23 }
 0x12f   : > { %1486 = vmatprep.subr.mxu1 %v1684_v46 }
 0x130   : > { %1487 = vmatpush3.msk.msra.mxu1 %vm376_vm6, %v621_v20 }
 0x131   : > { %1488 = vmatprep.subr.mxu1 %v1684_v46 }
 0x132   : > { %1489 = vmatpush3.msk.msra.mxu1 %vm375_vm5, %v620_v13  ;;  %vm1685_vm5 = vmmov 0   ;;  %v2204_v13 = vld [vmem:[%s2311_s5] ss:$0 sm:$0xff] }
 0x133   : > { %1490 = vmatprep.subr.mxu1 %v1684_v46  ;;  %1461 = vmatprep.mubr.msk.f32.mxu0 %vm1685_vm5, %v1684_v46 }
 0x134   : > { %1491 = vmatpush3.msk.msra.mxu1 %vm374_vm4, %v619_v10  ;;  %1496 = vmatprep.mubr.msk.f32.mxu1 %vm1685_vm5, %v1684_v46  ;;  %vm971_vm4 = vcmask 0  }
 0x135   : > { %1492 = vmatprep.subr.mxu1 %v1684_v46 }
 0x136   : > { %1493 = vmatpush3.msk.msra.mxu1 %vm373_vm3, %v618_v3  ;;  %vm945_vm3 = vcmask 1040384  }
 0x137   : > { %1494 = vmatprep.subr.mxu1 %v1684_v46 }
 0x138   : > { %1495 = vmatpush3.msk.msra.mxu1 %vm372_vm2, %v617_v0  ;;  %vm941_vm2 = vcmp.lt.s32.totalorder %v940_v17, %v1950_v55  ;;  %v960_v55 = vsub.s32 0, %v1933_v48 }
 0x1c1   : > { %v2195_v51 = vpop.f32.mrf.mxu1 }
 0x1c2   : > { %v776_v57 = vadd.f32 %v2195_v51, %v2204_v13 }
 0x1c3   : > { %v2197_v58 = vpop.f32.mrf.mxu1 }
 0x1c4   : > { %v771_v61 = vadd.f32 %v2204_v13, %v2197_v58 }
 0x1c5   : > { %v1410_v62 = vpop.f32.mrf.mxu1 }
 0x1c6   : > { %v786_v45 = vadd.f32 %v1410_v62, %v2204_v13 }
 0x1c7   : > { %v2199_v56 = vpop.f32.mrf.mxu1 }
 0x1c8   : > { %v781_v52 = vadd.f32 %v2204_v13, %v2199_v56 }
 0x1c9   : > { %v1413_v1 = vpop.f32.mrf.mxu1 }
 0x1ca   : > { %v796_v41 = vadd.f32 %v1413_v1, %v2204_v13 }
 0x1cb   : > { %v790_v3 = vpop.f32.mrf.mxu1 }
 0x1cc   : > { %v791_v43 = vadd.f32 %v2204_v13, %v790_v3 }
 0x1cd   : > { %v1416_v4 = vpop.f32.mrf.mxu1 }
 0x1ce   : > { %v806_v37 = vadd.f32 %v1416_v4, %v2204_v13 }
 0x1cf   : > { %v800_v60 = vpop.f32.mrf.mxu1 }
 0x1d0   : > { %v801_v39 = vadd.f32 %v2204_v13, %v800_v60 }
 0x1d1   : > { %v1419_v6 = vpop.f32.mrf.mxu1 }
 0x1d2   : > { %v816_v31 = vadd.f32 %v1419_v6, %v2204_v13 }
 0x1d3   : > { %v810_v8 = vpop.f32.mrf.mxu1 }
 0x1d4   : > { %v811_v35 = vadd.f32 %v2204_v13, %v810_v8  ;;  %v965_v8 = vld [vmem:[#allocation3] sm:$0x1] }
 0x1d5   : > { %v1422_v53 = vpop.f32.mrf.mxu1 }
 0x1d6   : > { %v826_v24 = vadd.f32 %v1422_v53, %v2204_v13 }
 0x1d7   : > { %v820_v0 = vpop.f32.mrf.mxu1 }
 0x1d8   : > { %v821_v28 = vadd.f32 %v2204_v13, %v820_v0 }
 0x1d9   : > { %v1425_v10 = vpop.f32.mrf.mxu1 }
 0x1da   : > { %v836_v21 = vadd.f32 %v1425_v10, %v2204_v13 }
 0x1db   : > { %v830_v11 = vpop.f32.mrf.mxu1 }
 0x1dc   : > { %v831_v23 = vadd.f32 %v2204_v13, %v830_v11 }
 0x1dd   : > { %v1428_v14 = vpop.f32.mrf.mxu1 }
 0x1de   : > { %v846_v16 = vadd.f32 %v1428_v14, %v2204_v13 }
 0x1df   : > { %v840_v18 = vpop.f32.mrf.mxu1 }
 0x1e0   : > { %1553 = vtanh.f32 %v846_v16  ;;  %v841_v20 = vadd.f32 %v2204_v13, %v840_v18  ;;  %v973_v13 = vld [vmem:[#allocation7] sm:$0x1] }
 0x1e2   : > { %1555 = vtanh.f32 %v841_v20 }
 0x1e3   : > { %1557 = vtanh.f32 %v836_v21 }
 0x1e4   : > { %1559 = vtanh.f32 %v831_v23 }
 0x1e5   : > { %1561 = vtanh.f32 %v826_v24 }
 0x1e6   : > { %1563 = vtanh.f32 %v821_v28 }
 0x1e7   : > { %1565 = vtanh.f32 %v816_v31 }
 0x1e8   : > { %1567 = vtanh.f32 %v811_v35 }
 0x1e9   : > { %1569 = vtanh.f32 %v806_v37 }
 0x1ea   : > { %1571 = vtanh.f32 %v801_v39 }
 0x1eb   : > { %1573 = vtanh.f32 %v796_v41 }
 0x1ec   : > { %1575 = vtanh.f32 %v791_v43 }
 0x1ed   : > { %v1554_v26 = vpop.eup %1553  ;;  %1577 = vtanh.f32 %v786_v45 }
 0x1ee   : > { %1430 = vmatpush3.xpose.msra.mxu0 %v1554_v26  ;;  %1579 = vtanh.f32 %v781_v52 }
 0x1ef   : > { %1431 = vmatprep.subr.mxu0 %v1684_v46  ;;  %v1556_v30 = vpop.eup %1555  ;;  %1581 = vtanh.f32 %v776_v57 }
 0x1f0   : > { %v1558_v33 = vpop.eup %1557  ;;  %1583 = vtanh.f32 %v771_v61 }
 0x1f1   : > { %v1560_v36 = vpop.eup %1559 }
 0x1f2   : > { %1432 = vmatpush3.xpose.msra.mxu0 %v1556_v30  ;;  %v1562_v38 = vpop.eup %1561 }
 0x1f3   : > { %1433 = vmatprep.subr.mxu0 %v1684_v46  ;;  %v1564_v40 = vpop.eup %1563 }
 0x1f4   : > { %v1566_v42 = vpop.eup %1565 }
 0x1f5   : > { %v1568_v44 = vpop.eup %1567 }
 0x1f6   : > { %1434 = vmatpush3.xpose.msra.mxu0 %v1558_v33  ;;  %v1570_v50 = vpop.eup %1569 }
 0x1f7   : > { %1435 = vmatprep.subr.mxu0 %v1684_v46  ;;  %v1572_v54 = vpop.eup %1571 }
 0x1f8   : > { %v1574_v59 = vpop.eup %1573 }
 0x1f9   : > { %v1576_v63 = vpop.eup %1575 }
 0x1fa   : > { %1436 = vmatpush3.xpose.msra.mxu0 %v1560_v36  ;;  %v1578_v2 = vpop.eup %1577 }
 0x1fb   : > { %1437 = vmatprep.subr.mxu0 %v1684_v46  ;;  %v1580_v5 = vpop.eup %1579 }
 0x1fc   : > { %v1582_v7 = vpop.eup %1581 }
 0x1fd   : > { %v1584_v9 = vpop.eup %1583 }
 0x1fe   : > { %1438 = vmatpush3.xpose.msra.mxu0 %v1562_v38 }
 0x1ff   : > { %1439 = vmatprep.subr.mxu0 %v1684_v46 }
 0x202   : > { %1440 = vmatpush3.xpose.msra.mxu0 %v1564_v40 }
 0x203   : > { %1441 = vmatprep.subr.mxu0 %v1684_v46 }
 0x206   : > { %1442 = vmatpush3.xpose.msra.mxu0 %v1566_v42 }
 0x207   : > { %1443 = vmatprep.subr.mxu0 %v1684_v46 }
 0x20a   : > { %1444 = vmatpush3.xpose.msra.mxu0 %v1568_v44 }
 0x20b   : > { %1445 = vmatprep.subr.mxu0 %v1684_v46 }
 0x20e   : > { %1446 = vmatpush3.xpose.msra.mxu0 %v1570_v50 }
 0x20f   : > { %1447 = vmatprep.subr.mxu0 %v1684_v46 }
 0x212   : > { %1448 = vmatpush3.xpose.msra.mxu0 %v1572_v54 }
 0x213   : > { %1449 = vmatprep.subr.mxu0 %v1684_v46 }
 0x216   : > { %1450 = vmatpush3.xpose.msra.mxu0 %v1574_v59 }
 0x217   : > { %1451 = vmatprep.subr.mxu0 %v1684_v46 }
 0x21a   : > { %1452 = vmatpush3.xpose.msra.mxu0 %v1576_v63 }
 0x21b   : > { %1453 = vmatprep.subr.mxu0 %v1684_v46 }
 0x21e   : > { %1454 = vmatpush3.xpose.msra.mxu0 %v1578_v2 }
 0x21f   : > { %1455 = vmatprep.subr.mxu0 %v1684_v46 }
 0x222   : > { %1456 = vmatpush3.xpose.msra.mxu0 %v1580_v5 }
 0x223   : > { %1457 = vmatprep.subr.mxu0 %v1684_v46 }
 0x226   : > { %1458 = vmatpush3.xpose.msra.mxu0 %v1582_v7 }
 0x227   : > { %1459 = vmatprep.subr.mxu0 %v1684_v46 }
 0x22a   : > { %1460 = vmatpush3.xpose.msra.mxu0 %v1584_v9 }
 0x22d   : > { %1462 = vmatmul.mubr.f32.vlgmr.msra.gmra.mxu0 %v865_v12 }
 0x2ed   : > { %v934_v22 = vpop.f32.mrf.mxu0 }
 0x2ee   : > { %v935_v25 = vadd.f32 %v934_v22, %v867_v19 }
 0x2ef   : > { %v1463_v46 = vpop.f32.mrf.mxu0 }
 0x2f0   : > { %v942_v27 = vsel %vm941_vm2, %v935_v25, -1e+30 }
 0x2f1   : > { %v946_v29 = vsel %vm945_vm3, %v942_v27, -inf  ;;  %943 = vst [vmem:[%s1811_s10] sm:$0x1] %v942_v27 }
 0x2f2   : > { %947 = vmax.xlane.f32.xlu0 %v946_v29 }
 0x37b   : > { %v948_v47 = vpop.xlane.xlu0 %947 }
 0x37c   : > { %v949_v51 = vmax.f32 %v944_v34, %v948_v47 }
 0x37e   : > { %v950_v49 = vsub.f32 %v944_v34, %v949_v51  ;;  %1056 = vst.msk [vmem:[#allocation2] sm:$0x1] %vm971_vm4, %v949_v51  ;;  %955 = vperm.xlu0 %1551, %v949_v51  }
 0x380   : > { %v951_v4 = vmul.f32 1.442695, %v950_v49 }
 0x3f9   : > { %v956_v58 = vpop.permute.xlu0 %955 }
 0x3fa   : > { %v961_v62 = vrot.slane %v956_v58, %v960_v55 }
 0x3fc   : > { %v962_v56 = vsub.f32 %v942_v27, %v961_v62 }
 0x3fe   : > { %v963_v1 = vmul.f32 1.442695, %v962_v56 }
 0x400   : > { %1585 = vpow2.f32 %v963_v1 }
 0x401   : > { %1587 = vpow2.f32 %v951_v4 }
 0x40d   : > { %v1586_v3 = vpop.eup %1585 }
 0x40e   : > { %1497 = vmatmul.mubr.f32.vlgmr.msra.gmra.mxu1 %v1586_v3  ;;  %v967_v60 = vsel %vm945_vm3, %v1586_v3, 0.0  ;;  %v1588_v6 = vpop.eup %1587 }
 0x40f   : > { %968 = vadd.xlane.f32.xlu1 %v967_v60  ;;  %v966_v53 = vmul.f32 %v1588_v6, %v965_v8 }
 0x420   : > { %976 = vperm.xlu1 %1552, %v1588_v6  }
 0x498   : > { %v969_v0 = vpop.xlane.xlu1 %968 }
 0x499   : > { %v970_v10 = vadd.f32 %v969_v0, %v966_v53 }
 0x49b   : > { %972 = vst.msk [vmem:[#allocation3] sm:$0x1] %vm971_vm4, %v970_v10 }
 0x49c   : > { %v977_v48 = vpop.permute.xlu1 %976 }
 0x49d   : > { %v982_v11 = vrot.slane %v977_v48, %v960_v55 }
 0x49f   : > { %v983_v14 = vmul.f32 %v982_v11, %v973_v13 }
 0x4cd   : > { %1060 = sbr.rel (%p1225_p12) target bundleno = 1379 (0x563), region = 56 }
 0x4ce   : > { %v1050_v16 = vpop.f32.mrf.mxu1 }
 0x4cf   : > { %v1054_v18 = vadd.f32 %v1050_v16, %v983_v14 }
 0x4d0   : > { %v1498_v20 = vpop.f32.mrf.mxu1 }
 0x4d1   : > { %1055 = vst [vmem:[#allocation7] sm:$0x1] %v1054_v18 }
 0x4d2   : > { %v1062_v21 = vld [vmem:[#allocation3] sm:$0x1]  ;;  %v1687_v23 = vmov 0  }
 0x4d3   : > { %1589 = vset.pattern.permute.xlu0 %v1687_v23 }
 0x4d4   : > { %1065 = vperm.xlu0 %1589, %v1062_v21  }
 0x4d8   : > { %v1061_v28 = vld [vmem:[#allocation7] sm:$0x1] }
 0x54f   : > { %v1066_v24 = vpop.permute.xlu0 %1065 }
 0x550   : > { %v1071_v26 = vrot.slane %v1066_v24, %v960_v55 }
 0x552   : > { %1590 = vrcp.f32 %v1071_v26 }
 0x55f   : > { %v1591_v30 = vpop.eup %1590 }
 0x560   : > { %v1073_v31 = vmul.f32 %v1591_v30, %v1061_v28 }
 0x562   : > { %1074 = vst [vmem:[#allocation7] sm:$0x1] %v1073_v31 }
 0x563 PF: > { %s1688_s18 = smov [#allocation7]   ;;  %s2257_s26 = scalar_lea.hbm %s2315_s9, %s1798_s24 }
 0x564   : > { %s1086_s19 = sshll.u32 %s1688_s18, 4  ;;  %s1099_s27 = sshll.u32 %s1811_s10, 4  ;;  %s1087_s19 = int_to_ptr.vmem [resolvable:$true] %s1086_s19  ;;  %s1100_s27 = int_to_ptr.vmem [resolvable:$true] %s1099_s27 }
 0x565   : > { %s1592_s28 = scalar_lea.vmem %s1087_s19, 16  ;;  %s1598_s25 = scalar_lea.vmem %s1087_s19, 32 }
 0x566   : > { %p1593_p13 = scmp.ne.s32.totalorder %s1087_s19, %s1592_s28  ;;  %p1599_p3 = scmp.lt.s32.totalorder %s1087_s19, %s1087_s19 }
 0x567   : > { %p1600_p4 = scmp.lt.s32.totalorder %s1598_s25, %s1592_s28 }
 0x568   : > { %p1594_p0 = pnand %p1593_p13, %p217_p2 }
 0x569   : > { %p1601_p7 = por %p1600_p4, %p1599_p3 }
 0x56a   : > { %p1595_p1 = pneg %p1594_p0 }
 0x56c   : > { %p1602_p8 = pnand %p1601_p7, %p1595_p1 }
 0x56e   : > { %1605 = shalt.err (!%p1602_p8)
}
 0x56f   : > { %1500 = dma.vmem_to_hbm [thread:$0]  (%p217_p2), %s1087_s19, 16, %s2314_s8, [#allocation8]  }
 0x570   : > { %s2319_s24 = sand.u32 1, %s1672_s14   ;;  %s1616_s12 = scalar_lea.vmem %s1100_s27, 16 }
 0x571   : > { %s1076_s10 = scalar_lea.sflag [#allocation10], %s2319_s24  ;;  %p1617_p9 = scmp.ne.s32.totalorder %s1100_s27, %s1616_s12 }
 0x572   : > { %s1689_s7 = smov [#allocation9]  }
 0x573   : > { %p1618_p10 = pnand %p1617_p9, %p1786_p5  ;;  %s1620_s18 = sshll.u32 %s1689_s7, 4  ;;  %s1621_s18 = int_to_ptr.vmem [resolvable:$false] %s1620_s18 }
 0x574   : > { %s1622_s30 = scalar_lea.vmem %s1621_s18, 32  ;;  %p1623_p12 = scmp.lt.s32.totalorder %s1100_s27, %s1621_s18 }
 0x575   : > { %p1619_p11 = pneg %p1618_p10  ;;  %p1624_p13 = scmp.lt.s32.totalorder %s1622_s30, %s1616_s12 }
 0x577   : > { %p1625_p0 = por %p1624_p13, %p1623_p12 }
 0x579   : > { %p1626_p1 = pnand %p1625_p0, %p1619_p11 }
 0x57b   : > { %1629 = shalt.err (!%p1626_p1)
}
 0x57c   : > { %s1630_s19 = scalar_lea.hbm %s2257_s26, 16  ;;  %s1634_s25 = scalar_lea.hbm %s2315_s9, 32 }
 0x57d   : > { %p1631_p3 = scmp.ne.s32.totalorder %s2257_s26, %s1630_s19  ;;  %p1635_p8 = scmp.lt.s32.totalorder %s2257_s26, %s2315_s9 }
 0x57e   : > { %p1636_p9 = scmp.lt.s32.totalorder %s1634_s25, %s1630_s19 }
 0x57f   : > { %p1632_p4 = pnand %p1631_p3, %p1786_p5 }
 0x580   : > { %p1637_p10 = por %p1636_p9, %p1635_p8 }
 0x581   : > { %p1633_p7 = pneg %p1632_p4 }
 0x583   : > { %p1638_p11 = pnand %p1637_p10, %p1633_p7 }
 0x585   : > { %1641 = shalt.err (!%p1638_p11)
}
 0x586   : > { %1501 = dma.vmem_to_hbm [thread:$0]  (%p1786_p5), %s1100_s27, 16, %s2257_s26, %s1076_s10  }
 0x587   : > { %1659 = dma.done.wait (%p217_p2), [#allocation8], 16  }
 0x588   : > { %1661 = vsyncadd (%p217_p2), [#allocation8], 4294967280 }
 0x589 PF: > { %p1511_p12 = scmp.ge.s32.totalorder %s1680_s16, 2  ;;  %s1115_s24 = sand.u32 1, %s1668_s13  }
 0x58a   : > { %s1116_s12 = scalar_lea.sflag [#allocation10], %s1115_s24 }
 0x58b   : > { %p1506_p13 = pnand %p1511_p12, %p1790_p6 }
 0x58d   : > { %p1507_p0 = pneg %p1506_p13 }
 0x58f   : > { %1663 = dma.done.wait (%p1507_p0), %s1116_s12, 16  }
 0x590   : > { %1665 = vsyncadd (%p1507_p0), %s1116_s12, 4294967280  ;;  %p23_p5 = scmp.ge.s32.totalorder %s1771_s17, 4   ;;  %s2320_s13 = smov %s1672_s14 }
 0x591   : > { %s2321_s14 = smov %s1676_s15  ;;  %s2322_s15 = smov %s1782_s20 }
 0x592   : > { %s2323_s16 = smov %s1771_s17  ;;  %25 = sbr.rel (!%p23_p5) target bundleno = 7 (0x7), region = 100 }
 0x597   :  { %1120 = vsyncpa [#allocation8], 1 }
 0x598   :  { %1122 = vsyncpa [#allocation8 + $0x1], 1 }
 0x599   :  { %1123 = vsyncpa [#allocation10], 1 }
 0x59a   :  { %1125 = vsyncpa [#allocation10 + $0x1], 1 }

</bundles_post_ra>
